<compile_context>
chip_gen: v7x
topology: tpu7x:2x2x1
jax: 0.10.0
libtpu: 0.0.40
codegen_flags: <defaults>
</compile_context>

<pallas_src>
from functools import partial

import jax
import jax.numpy as jnp
from jax import lax
from jax.experimental import pallas as pl
from jax.experimental.pallas import tpu as pltpu


def _round_up(x, m):
    return (x + m - 1) // m * m


def conv_block_kernel(x_ref, w_ref, b_ref, o_ref, *, kernel, dilations, t_out_pad):
    """Fused ConvBlock forward for one batch element.

    x_ref : (1, T, Dp)         input tile (lanes = padded model dim)
    w_ref : (N, K, Dp, 2*Dp)   per-layer / per-tap weights, columns = [Wf | Wg]
    b_ref : (N, 1, 2*Dp)       per-layer biases, [bf | bg] (float32)
    o_ref : (1, t_out_pad, Dp) padded output tile
    """
    dp = x_ref.shape[2]
    t = x_ref.shape[1]
    n_layers = w_ref.shape[0]

    x = x_ref[0]  # (T, Dp)
    for l in range(n_layers):                       # static unroll over layers
        d = dilations[l]
        t_l = t - (kernel - 1) * d                  # VALID-conv output length
        acc = jnp.broadcast_to(b_ref[l], (t_l, 2 * dp)).astype(jnp.float32)
        for k in range(kernel):                     # static unroll over taps (K small)
            # TODO(synk): for k*d not a multiple of 8 this slice costs a sublane
            # re-align copy; a pltpu.roll / im2col shift would move it to the XLU.
            xk = x[k * d : k * d + t_l, :]
            acc = acc + jnp.dot(xk, w_ref[l, k], preferred_element_type=jnp.float32)
        f = jnp.tanh(acc[:, :dp])                   # f32 epilogue (v5e has no bf16 VPU/EUP)
        g = jax.nn.sigmoid(acc[:, dp:])
        x = (f * g).astype(w_ref.dtype)             # next-layer matmul operand dtype
        t = t_l

    if t_out_pad > t:                               # pad rows -> dense unmasked store
        x = jnp.concatenate(
            [x, jnp.zeros((t_out_pad - t, dp), x.dtype)], axis=0)
    o_ref[0] = x.astype(o_ref.dtype)


def conv_block_forward(x, w_stacked, b_stacked, *, kernel, dilations):
    """ConvBlock.forward: (B, T, D) -> (B, T_out, D), one fused pallas_call."""
    B, T, D = x.shape
    n_layers, K, Dp, two_dp = w_stacked.shape
    assert K == kernel and two_dp == 2 * Dp and len(dilations) == n_layers

    t_out = T - sum((kernel - 1) * d for d in dilations)
    assert t_out > 0, "input too short for this receptive field"
    t_out_pad = _round_up(t_out, 16)   # dense sublane stores for both f32 and bf16

    if Dp > D:                         # lane padding (zeros; padded channels stay 0)
        x = jnp.pad(x, ((0, 0), (0, 0), (0, Dp - D)))

    # Explicit VMEM budget: double-buffered x / out blocks + weight & bias blocks.
    isz = jnp.dtype(x.dtype).itemsize
    vmem_bytes = (2 * (T * Dp + t_out_pad * Dp) * isz
                  + 2 * (w_stacked.size * jnp.dtype(w_stacked.dtype).itemsize
                         + b_stacked.size * jnp.dtype(b_stacked.dtype).itemsize)
                  + (2 << 20))
    vmem_limit = int(min(max(vmem_bytes, 16 << 20), 32 << 20))

    out = pl.pallas_call(
        partial(conv_block_kernel, kernel=kernel, dilations=tuple(dilations),
                t_out_pad=t_out_pad),
        out_shape=jax.ShapeDtypeStruct((B, t_out_pad, Dp), x.dtype),
        grid_spec=pltpu.PrefetchScalarGridSpec(
            num_scalar_prefetch=0,
            grid=(B,),
            in_specs=[
                pl.BlockSpec((1, T, Dp), lambda b: (b, 0, 0)),                    # x
                # constant index maps -> Pallas reuses the buffer across grid steps
                pl.BlockSpec((n_layers, kernel, Dp, 2 * Dp), lambda b: (0, 0, 0, 0)),
                pl.BlockSpec((n_layers, 1, 2 * Dp), lambda b: (0, 0, 0)),
            ],
            out_specs=pl.BlockSpec((1, t_out_pad, Dp), lambda b: (b, 0, 0)),
        ),
        compiler_params=pltpu.CompilerParams(
            dimension_semantics=("parallel",),
            vmem_limit_bytes=vmem_limit,
        ),
    )(x, w_stacked, b_stacked)
    return out[:, :t_out, :D]


def init_conv_block_params(key, dim, n_layers, kernel):
    """Deterministic synthetic params in the torch Conv1d layout: weight (D_out, D_in, K)."""
    params = []
    scale = 1.0 / jnp.sqrt(dim * kernel)
    for _ in range(n_layers):
        kf, kg, kbf, kbg, key = jax.random.split(key, 5)
        wf_t = jax.random.normal(kf, (dim, dim, kernel), jnp.float32) * scale
        wg_t = jax.random.normal(kg, (dim, dim, kernel), jnp.float32) * scale
        bf = jax.random.normal(kbf, (dim,), jnp.float32) * scale
        bg = jax.random.normal(kbg, (dim,), jnp.float32) * scale
        params.append((wf_t, bf, wg_t, bg))
    return params


def pack_params(params, *, lane_multiple=128, dtype=jnp.float32):
    """One-time repack (hoisted out of forward): transpose torch weights to (K, D_in, D_out),
    zero-pad the model dim to a lane multiple, concat the f/g gates along the output dim."""
    dim = params[0][0].shape[0]
    dp = _round_up(dim, lane_multiple)
    ws, bs = [], []
    for wf_t, bf, wg_t, bg in params:
        wf = jnp.transpose(wf_t, (2, 1, 0))           # (K, D_in, D_out)
        wg = jnp.transpose(wg_t, (2, 1, 0))
        pad_w = ((0, 0), (0, dp - dim), (0, dp - dim))
        wf = jnp.pad(wf, pad_w)
        wg = jnp.pad(wg, pad_w)
        ws.append(jnp.concatenate([wf, wg], axis=-1))                  # (K, Dp, 2Dp)
        bf_p = jnp.pad(bf, (0, dp - dim))
        bg_p = jnp.pad(bg, (0, dp - dim))
        bs.append(jnp.concatenate([bf_p, bg_p])[None, :])              # (1, 2Dp)
    w_stacked = jnp.stack(ws).astype(dtype)                            # (N, K, Dp, 2Dp)
    b_stacked = jnp.stack(bs).astype(jnp.float32)                      # (N, 1, 2Dp)
    return w_stacked, b_stacked


def conv_block_reference(x, params, *, kernel=2, dilated=False):
    """Pure-JAX reference using lax.conv (matches torch Conv1d semantics)."""
    x_ncw = jnp.transpose(x, (0, 2, 1))  # (B, D, T)
    for i, (wf_t, bf, wg_t, bg) in enumerate(params):
        dilation = 2 ** i if dilated else 1
        dn = lax.conv_dimension_numbers(x_ncw.shape, wf_t.shape, ("NCH", "OIH", "NCH"))

        def conv1d(w, b):
            y = lax.conv_general_dilated(
                x_ncw, w, window_strides=(1,), padding="VALID",
                rhs_dilation=(dilation,), dimension_numbers=dn)
            return y + b[None, :, None]

        x_ncw = jnp.tanh(conv1d(wf_t, bf)) * jax.nn.sigmoid(conv1d(wg_t, bg))
    return jnp.transpose(x_ncw, (0, 2, 1))


if __name__ == "__main__":
    B, T, D = 2, 16, 32
    N_LAYERS, KERNEL = 2, 2

    key = jax.random.PRNGKey(0)
    kx, kp = jax.random.split(key)
    x = jax.random.normal(kx, (B, T, D), jnp.float32)  # (batch, time, model_dim)
    params = init_conv_block_params(kp, D, N_LAYERS, KERNEL)

    # f32 path: non-dilated (module default) and dilated variants, tight tolerance.
    for dilated in (False, True):
        dilations = tuple((2 ** i if dilated else 1) for i in range(N_LAYERS))
        w_p, b_p = pack_params(params)
        out = conv_block_forward(x, w_p, b_p, kernel=KERNEL, dilations=dilations)
        out = jax.block_until_ready(out)
        ref = conv_block_reference(x, params, kernel=KERNEL, dilated=dilated)
        t_out = T - sum((KERNEL - 1) * d for d in dilations)
        assert out.shape == (B, t_out, D), out.shape
        assert jnp.allclose(out, ref, atol=1e-5, rtol=1e-5), f"mismatch (dilated={dilated})"

    # bf16 operand path (v6e / v7x): bf16 matmul operands, f32 accumulation & epilogue.
    w_bf, b_bf = pack_params(params, dtype=jnp.bfloat16)
    out_bf = conv_block_forward(x.astype(jnp.bfloat16), w_bf, b_bf,
                                kernel=KERNEL, dilations=(1,) * N_LAYERS)
    out_bf = jax.block_until_ready(out_bf)
    ref_f32 = conv_block_reference(x, params, kernel=KERNEL, dilated=False)
    assert out_bf.shape == ref_f32.shape, out_bf.shape
    assert jnp.allclose(out_bf.astype(jnp.float32), ref_f32, atol=0.15, rtol=0.0), \
        "bf16 mismatch (loose tolerance)"

    print("KERNEL_OK")
</pallas_src>

<mosaic_0001>
module attributes {stable_mosaic.version = 11 : i64} {
  func.func @conv_block_kernel(%arg0: i32, %arg1: memref<1x16x128xf32, #tpu.memory_space<vmem>>, %arg2: memref<2x2x128x256xf32, #tpu.memory_space<vmem>>, %arg3: memref<2x1x256xf32, #tpu.memory_space<vmem>>, %arg4: memref<1x16x128xf32, #tpu.memory_space<vmem>>) attributes {dimension_semantics = [#tpu.dimension_semantics<parallel>], iteration_bounds = array<i64: 2>, scalar_prefetch = 0 : i64, scratch_operands = 0 : i64, tpu.core_type = #tpu.core_type<tc>, window_params = [{transform_indices = @transform_0, window_bounds = array<i64: 1, 16, 128>}, {pipeline_mode = #tpu.pipeline_mode<synchronous>, transform_indices = @transform_1, window_bounds = array<i64: 2, 2, 128, 256>}, {pipeline_mode = #tpu.pipeline_mode<synchronous>, transform_indices = @transform_2, window_bounds = array<i64: 2, 1, 256>}, {transform_indices = @transform_3, window_bounds = array<i64: 1, 16, 128>}]} {
    %c0 = arith.constant 0 : index
    %c0_0 = arith.constant 0 : index
    %c0_1 = arith.constant 0 : index
    %0 = vector.load %arg1[%c0, %c0_0, %c0_1] : memref<1x16x128xf32, #tpu.memory_space<vmem>>, vector<1x16x128xf32>
    %1 = vector.shape_cast %0 : vector<1x16x128xf32> to vector<16x128xf32>
    %c0_2 = arith.constant 0 : index
    %c0_3 = arith.constant 0 : index
    %c0_4 = arith.constant 0 : index
    %2 = vector.load %arg3[%c0_2, %c0_3, %c0_4] : memref<2x1x256xf32, #tpu.memory_space<vmem>>, vector<1x1x256xf32>
    %3 = vector.shape_cast %2 : vector<1x1x256xf32> to vector<1x256xf32>
    %4 = vector.shape_cast %3 : vector<1x256xf32> to vector<1x256xf32>
    %5 = vector.broadcast %4 : vector<1x256xf32> to vector<15x256xf32>
    %6 = vector.extract_strided_slice %1 {offsets = [0, 0], sizes = [15, 128], strides = [1, 1]} : vector<16x128xf32> to vector<15x128xf32>
    %c0_5 = arith.constant 0 : index
    %c0_6 = arith.constant 0 : index
    %c0_7 = arith.constant 0 : index
    %c0_8 = arith.constant 0 : index
    %7 = vector.load %arg2[%c0_5, %c0_6, %c0_7, %c0_8] : memref<2x2x128x256xf32, #tpu.memory_space<vmem>>, vector<1x1x128x256xf32>
    %8 = vector.shape_cast %7 : vector<1x1x128x256xf32> to vector<128x256xf32>
    %cst = arith.constant dense<0.000000e+00> : vector<15x256xf32>
    %9 = tpu.matmul %6, %8, %cst {dimension_numbers = #tpu.dot_dimension_numbers<[1], [0], [0], [1], [0, 0, 1, 1], [], []>} : vector<15x128xf32>, vector<128x256xf32>, vector<15x256xf32> -> vector<15x256xf32>
    %10 = arith.addf %5, %9 : vector<15x256xf32>
    %11 = vector.extract_strided_slice %1 {offsets = [1, 0], sizes = [15, 128], strides = [1, 1]} : vector<16x128xf32> to vector<15x128xf32>
    %c0_9 = arith.constant 0 : index
    %c1 = arith.constant 1 : index
    %c0_10 = arith.constant 0 : index
    %c0_11 = arith.constant 0 : index
    %12 = vector.load %arg2[%c0_9, %c1, %c0_10, %c0_11] : memref<2x2x128x256xf32, #tpu.memory_space<vmem>>, vector<1x1x128x256xf32>
    %13 = vector.shape_cast %12 : vector<1x1x128x256xf32> to vector<128x256xf32>
    %cst_12 = arith.constant dense<0.000000e+00> : vector<15x256xf32>
    %14 = tpu.matmul %11, %13, %cst_12 {dimension_numbers = #tpu.dot_dimension_numbers<[1], [0], [0], [1], [0, 0, 1, 1], [], []>} : vector<15x128xf32>, vector<128x256xf32>, vector<15x256xf32> -> vector<15x256xf32>
    %15 = arith.addf %10, %14 : vector<15x256xf32>
    %16 = vector.extract_strided_slice %15 {offsets = [0, 0], sizes = [15, 128], strides = [1, 1]} : vector<15x256xf32> to vector<15x128xf32>
    %17 = math.tanh %16 : vector<15x128xf32>
    %18 = vector.extract_strided_slice %15 {offsets = [0, 128], sizes = [15, 128], strides = [1, 1]} : vector<15x256xf32> to vector<15x128xf32>
    %19 = arith.negf %18 : vector<15x128xf32>
    %20 = math.exp %19 : vector<15x128xf32>
    %cst_13 = arith.constant 1.000000e+00 : f32
    %21 = vector.broadcast %cst_13 : f32 to vector<15x128xf32>
    %22 = arith.addf %21, %20 : vector<15x128xf32>
    %23 = arith.divf %21, %22 : vector<15x128xf32>
    %24 = arith.mulf %17, %23 : vector<15x128xf32>
    %c1_14 = arith.constant 1 : index
    %c0_15 = arith.constant 0 : index
    %c0_16 = arith.constant 0 : index
    %25 = vector.load %arg3[%c1_14, %c0_15, %c0_16] : memref<2x1x256xf32, #tpu.memory_space<vmem>>, vector<1x1x256xf32>
    %26 = vector.shape_cast %25 : vector<1x1x256xf32> to vector<1x256xf32>
    %27 = vector.shape_cast %26 : vector<1x256xf32> to vector<1x256xf32>
    %28 = vector.broadcast %27 : vector<1x256xf32> to vector<14x256xf32>
    %29 = vector.extract_strided_slice %24 {offsets = [0, 0], sizes = [14, 128], strides = [1, 1]} : vector<15x128xf32> to vector<14x128xf32>
    %c1_17 = arith.constant 1 : index
    %c0_18 = arith.constant 0 : index
    %c0_19 = arith.constant 0 : index
    %c0_20 = arith.constant 0 : index
    %30 = vector.load %arg2[%c1_17, %c0_18, %c0_19, %c0_20] : memref<2x2x128x256xf32, #tpu.memory_space<vmem>>, vector<1x1x128x256xf32>
    %31 = vector.shape_cast %30 : vector<1x1x128x256xf32> to vector<128x256xf32>
    %cst_21 = arith.constant dense<0.000000e+00> : vector<14x256xf32>
    %32 = tpu.matmul %29, %31, %cst_21 {dimension_numbers = #tpu.dot_dimension_numbers<[1], [0], [0], [1], [0, 0, 1, 1], [], []>} : vector<14x128xf32>, vector<128x256xf32>, vector<14x256xf32> -> vector<14x256xf32>
    %33 = arith.addf %28, %32 : vector<14x256xf32>
    %34 = vector.extract_strided_slice %24 {offsets = [1, 0], sizes = [14, 128], strides = [1, 1]} : vector<15x128xf32> to vector<14x128xf32>
    %c1_22 = arith.constant 1 : index
    %c1_23 = arith.constant 1 : index
    %c0_24 = arith.constant 0 : index
    %c0_25 = arith.constant 0 : index
    %35 = vector.load %arg2[%c1_22, %c1_23, %c0_24, %c0_25] : memref<2x2x128x256xf32, #tpu.memory_space<vmem>>, vector<1x1x128x256xf32>
    %36 = vector.shape_cast %35 : vector<1x1x128x256xf32> to vector<128x256xf32>
    %cst_26 = arith.constant dense<0.000000e+00> : vector<14x256xf32>
    %37 = tpu.matmul %34, %36, %cst_26 {dimension_numbers = #tpu.dot_dimension_numbers<[1], [0], [0], [1], [0, 0, 1, 1], [], []>} : vector<14x128xf32>, vector<128x256xf32>, vector<14x256xf32> -> vector<14x256xf32>
    %38 = arith.addf %33, %37 : vector<14x256xf32>
    %39 = vector.extract_strided_slice %38 {offsets = [0, 0], sizes = [14, 128], strides = [1, 1]} : vector<14x256xf32> to vector<14x128xf32>
    %40 = math.tanh %39 : vector<14x128xf32>
    %41 = vector.extract_strided_slice %38 {offsets = [0, 128], sizes = [14, 128], strides = [1, 1]} : vector<14x256xf32> to vector<14x128xf32>
    %42 = arith.negf %41 : vector<14x128xf32>
    %43 = math.exp %42 : vector<14x128xf32>
    %cst_27 = arith.constant 1.000000e+00 : f32
    %44 = vector.broadcast %cst_27 : f32 to vector<14x128xf32>
    %45 = arith.addf %44, %43 : vector<14x128xf32>
    %46 = arith.divf %44, %45 : vector<14x128xf32>
    %47 = arith.mulf %40, %46 : vector<14x128xf32>
    %cst_28 = arith.constant 0.000000e+00 : f32
    %48 = vector.broadcast %cst_28 : f32 to vector<2x128xf32>
    %49 = tpu.concatenate %47, %48 in 0 : vector<14x128xf32>, vector<2x128xf32> -> vector<16x128xf32>
    %c0_29 = arith.constant 0 : index
    %c0_30 = arith.constant 0 : index
    %c0_31 = arith.constant 0 : index
    %50 = vector.load %arg4[%c0_29, %c0_30, %c0_31] : memref<1x16x128xf32, #tpu.memory_space<vmem>>, vector<1x16x128xf32>
    %51 = vector.shape_cast %50 : vector<1x16x128xf32> to vector<16x128xf32>
    %52 = vector.shape_cast %49 : vector<16x128xf32> to vector<1x16x128xf32>
    tpu.vector_store %arg4[%c0_29, %c0_30, %c0_31], %52 {strides = array<i32>} : memref<1x16x128xf32, #tpu.memory_space<vmem>>, vector<1x16x128xf32>,
    return
  }
  func.func @transform_0(%arg0: i32) -> (i32, i32, i32) {
    %c0_i32 = arith.constant 0 : i32
    %c0_i32_0 = arith.constant 0 : i32
    %c0_i32_1 = arith.constant 0 : i32
    return %arg0, %c0_i32, %c0_i32_0 : i32, i32, i32
  }
  func.func @transform_1(%arg0: i32) -> (i32, i32, i32, i32) {
    %c0_i32 = arith.constant 0 : i32
    %c0_i32_0 = arith.constant 0 : i32
    %c0_i32_1 = arith.constant 0 : i32
    %c0_i32_2 = arith.constant 0 : i32
    %c0_i32_3 = arith.constant 0 : i32
    return %c0_i32, %c0_i32_0, %c0_i32_1, %c0_i32_2 : i32, i32, i32, i32
  }
  func.func @transform_2(%arg0: i32) -> (i32, i32, i32) {
    %c0_i32 = arith.constant 0 : i32
    %c0_i32_0 = arith.constant 0 : i32
    %c0_i32_1 = arith.constant 0 : i32
    %c0_i32_2 = arith.constant 0 : i32
    return %c0_i32, %c0_i32_0, %c0_i32_1 : i32, i32, i32
  }
  func.func @transform_3(%arg0: i32) -> (i32, i32, i32) {
    %c0_i32 = arith.constant 0 : i32
    %c0_i32_0 = arith.constant 0 : i32
    %c0_i32_1 = arith.constant 0 : i32
    return %arg0, %c0_i32, %c0_i32_0 : i32, i32, i32
  }
}

</mosaic_0001>

<bundles_post_ra>
// kernel: tpu_custom_call.1
= control target key start
LH: loop header
LB: loop body
LE: loop exit
PB: predicated region body
PF: predicated region fallthrough
CT: control target
= control target key end

     0   :  { %8 = vsyncpa [#allocation3], 0  ;;  %s1490_s0 = inlined_call_operand.hbm [shape: f32[2,16,128], index: 0, kind: input, shape index: {}]   ;;  %s1491_s1 = inlined_call_operand.hbm [shape: f32[2,2,128,256], index: 1, kind: input, shape index: {}]   ;;  %s1492_s2 = inlined_call_operand.vmem [shape: f32[2,1,256], index: 2, kind: input, shape index: {}]   ;;  %s1493_s3 = inlined_call_operand.hbm [shape: f32[2,16,128], index: 3, kind: output, shape index: {}]  }
   0x1   :  { %10 = vsyncpa [#allocation3 + $0x1], 0 }
   0x2   :  { %11 = vsyncpa [#allocation6], 0 }
   0x3   :  { %12 = vsyncpa [#allocation4], 0 }
   0x4   :  { %14 = vsyncpa [#allocation4 + $0x1], 0  ;;  %s1249_s12 = smov 0   ;;  %s1251_s13 = smov 0  }
   0x5   :  { %s1253_s14 = smov 0   ;;  %s1255_s15 = smov 0  }
   0x6 LB: > { %s1270_s16 = sadd.s32 4294967295, %s1217_s15   ;;  %s834_s17 = sadd.s32 4294967294, %s1217_s15   ;;  %s1217_s15 = sphi %s1255_s15, %s1513_s15   ;;  %s1213_s14 = sphi %s1253_s14, %s1512_s14   ;;  %s1209_s13 = sphi %s1251_s13, %s1511_s13   ;;  %s1205_s12 = sphi %s1249_s12, %s1510_s12  }
   0x7   : > { %p40_p0 = scmp.ne.s32.totalorder %s1209_s13, %s1205_s12  ;;  %p1494_p1 = scmp.eq.s32.totalorder %s1270_s16, 0 }
   0x8   : > { %p112_p3 = scmp.eq.s32.totalorder %s834_s17, 1  ;;  %p835_p5 = scmp.ge.s32.totalorder %s1217_s15, 1 }
   0x9   : > { %p1279_p4 = por %p1494_p1, %p40_p0  ;;  %p119_p7 = scmp.lt.s32.totalorder %s1217_s15, 3 }
   0xa   : > { %p1284_p6 = por %p112_p3, %p40_p0  ;;  %s1219_s21 = smov [#allocation5]  }
   0xb   : > { %s1497_s18 = scalar_select %p1279_p4, 1, 0 }
   0xc   : > { %s1498_s19 = scalar_select %p1284_p6, 1, 0 }
   0xd   : > { %p1289_p8 = pnand %p835_p5, %p119_p7  ;;  %s131_s22 = sshll.u32 %s1219_s21, 4  ;;  %s1293_s22 = int_to_ptr.vmem [resolvable:$true] %s131_s22 }
   0xe   : > { %s1305_s24 = sadd.s32 1, %s1217_s15   ;;  %s27_s25 = sadd.s32 1, %s1213_s14 }
   0xf   : > { %s1499_s20 = scalar_select %p1289_p8, 1, 0 }
  0x10   : > { %p1009_p9 = pneg %p1289_p8  ;;  %s24_s26 = ssub.s32 %s1217_s15, %s1305_s24 }
  0x11   : > { %s1089_s29 = scalar_lea.hbm %s1491_s1, 16384 }
  0x12   : > { %p1300_p11 = pnand %p1009_p9, %p1494_p1  ;;  %p1090_p12 = scmp.ne.s32.totalorder %s1491_s1, %s1089_s29 }
  0x13   : > { %p1096_p5 = scmp.lt.u32.totalorder %s1089_s29, %s1491_s1 }
  0x14   : > { %p1091_p13 = pneg %p1300_p11 }
  0x16   : > { %p1092_p0 = pnand %p1091_p13, %p1090_p12 }
  0x18   : > { %p1093_p3 = pneg %p1092_p0 }
  0x1a   : > { %p1098_p7 = pnand %p1096_p5, %p1093_p3 }
  0x1c   : > { %1101 = shalt.err (!%p1098_p7)
}
  0x1d   : > { %s1102_s7 = scalar_lea.vmem %s1293_s22, 16384  ;;  %p1110_p2 = scmp.lt.s32.totalorder %s1293_s22, %s1293_s22 }
  0x1e   : > { %p1103_p9 = scmp.ne.s32.totalorder %s1293_s22, %s1102_s7  ;;  %p1111_p6 = scmp.lt.s32.totalorder %s1102_s7, %s1102_s7 }
  0x20   : > { %p1105_p10 = pnand %p1103_p9, %p1091_p13  ;;  %p1112_p4 = por %p1111_p6, %p1110_p2 }
  0x22   : > { %p1106_p1 = pneg %p1105_p10 }
  0x24   : > { %p1113_p8 = pnand %p1112_p4, %p1106_p1 }
  0x26   : > { %1116 = shalt.err (!%p1113_p8)
}
  0x27   : > { %s1220_s8 = smov 256   ;;  %s1221_s9 = smov 16  }
  0x28   : > { %1012 = dma.hbm_to_vmem [thread:$0]  (!%p1300_p11), %s1491_s1, 16384, %s1293_s22, [#allocation6], %s1220_s8, %s1220_s8, %s1221_s9  }
  0x29   : > { %p25_p2 = scmp.eq.s32.totalorder %s24_s26, 0  ;;  %p34_p1 = scmp.ne.s32.totalorder %s1213_s14, %s1209_s13 }
  0x2a   : > { %p35_p4 = scmp.eq.s32.totalorder %s1217_s15, 0  ;;  %p1022_p6 = scmp.lt.s32.totalorder %s1217_s15, 2 }
  0x2b   : > { %s1336_s17 = scalar_select %p25_p2, %s1213_s14, %s27_s25  }
  0x2c   : > { %p36_p8 = por %p35_p4, %p34_p1  ;;  %p1501_p10 = scmp.eq.s32.totalorder %s1270_s16, 1 }
  0x2d   : > { %s148_s27 = sand.u32 1, %s1213_s14   ;;  %s855_s28 = sshll.u32 %s1217_s15, 8 }
  0x2e   : > { %p1340_p12 = por %p1501_p10, %p34_p1  ;;  %s838_s29 = sshll.u32 %s148_s27, 4 }
  0x2f   : > { %s1349_s4 = scalar_lea.hbm %s1490_s0, %s855_s28  ;;  %s152_s22 = scalar_lea.vmem [#allocation2], %s838_s29 }
  0x30   : > { %s159_s25 = sshll.u32 %s152_s22, 4  ;;  %p1351_p11 = pnand %p1022_p6, %p36_p8  ;;  %s1355_s25 = int_to_ptr.vmem [resolvable:$true] %s159_s25 }
  0x31   : > { %s1357_s5 = scalar_lea.sflag [#allocation3], %s148_s27  ;;  %s1117_s6 = scalar_lea.hbm %s1349_s4, 256 }
  0x32   : > { %p1118_p13 = scmp.ne.s32.totalorder %s1349_s4, %s1117_s6  ;;  %p1119_p0 = pneg %p1351_p11 }
  0x33   : > { %s1122_s9 = scalar_lea.hbm %s1490_s0, 512  ;;  %p1123_p7 = scmp.lt.u32.totalorder %s1349_s4, %s1490_s0 }
  0x34   : > { %p1120_p3 = pnand %p1119_p0, %p1118_p13  ;;  %p1124_p9 = scmp.lt.u32.totalorder %s1122_s9, %s1117_s6 }
  0x35   : > { %p1126_p1 = scmp.lt.u32.totalorder %s1117_s6, %s1349_s4 }
  0x36   : > { %p1121_p5 = pneg %p1120_p3  ;;  %p1125_p2 = por %p1124_p9, %p1123_p7 }
  0x38   : > { %p1127_p4 = por %p1126_p1, %p1125_p2 }
  0x3a   : > { %p1128_p6 = pnand %p1127_p4, %p1121_p5 }
  0x3c   : > { %1131 = shalt.err (!%p1128_p6)
}
  0x3d   : > { %s1132_s27 = scalar_lea.vmem %s1355_s25, 256  ;;  %s1222_s28 = smov [#allocation2]  }
  0x3e   : > { %p1133_p8 = scmp.ne.s32.totalorder %s1355_s25, %s1132_s27  ;;  %s1137_s29 = sshll.u32 %s1222_s28, 4  ;;  %s1138_s29 = int_to_ptr.vmem [resolvable:$false] %s1137_s29 }
  0x3f   : > { %s1139_s23 = scalar_lea.vmem %s1138_s29, 512  ;;  %p1140_p3 = scmp.lt.s32.totalorder %s1355_s25, %s1138_s29 }
  0x40   : > { %p1135_p10 = pnand %p1133_p8, %p1119_p0  ;;  %p1141_p7 = scmp.lt.s32.totalorder %s1139_s23, %s1132_s27 }
  0x42   : > { %p1136_p13 = pneg %p1135_p10  ;;  %p1142_p9 = por %p1141_p7, %p1140_p3 }
  0x44   : > { %p1143_p2 = pnand %p1142_p9, %p1136_p13 }
  0x46   : > { %1146 = shalt.err (!%p1143_p2)
}
  0x47   : > { %s1223_s30 = smov 128   ;;  %s1224_s22 = smov 8  }
  0x48   : > { %1016 = dma.hbm_to_vmem [thread:$0]  (!%p1351_p11), %s1349_s4, 256, %s1355_s25, %s1357_s5, %s1223_s30, %s1223_s30, %s1224_s22  }
  0x49   : > { %p1504_p0 = scmp.ne.s32.totalorder %s1499_s20, 0 }
  0x4a   : > { %s1388_s6 = sand.u32 (!%p1504_p0), 1, %s1209_s13   ;;  %p1505_p5 = scmp.ne.s32.totalorder (!%p1504_p0), %s1497_s18, 0 }
  0x4b   : > { %171 = sbr.rel (%p1504_p0) target bundleno = 691 (0x2b3), region = 32  ;;  %s842_s7 = sshll.u32 (!%p1504_p0), %s1388_s6, 4 }
  0x4c   : > { %s174_s8 = scalar_lea.sflag (!%p1504_p0), [#allocation3], %s1388_s6  ;;  %s1394_s9 = scalar_lea.vmem (!%p1504_p0), [#allocation2], %s842_s7 }
  0x52   : > { %1192 = dma.done.wait (%p1505_p5), %s174_s8, 256  }
  0x53   : > { %1194 = vsyncadd (%p1505_p5), %s174_s8, 4294967040  ;;  %p1506_p11 = scmp.eq.s32.totalorder %s1270_s16, 0 }
  0x55   : > { %1196 = dma.done.wait (%p1506_p11), [#allocation6], 16384   ;;  %p1507_p1 = pmov %p1506_p11 }
  0x56   : > { %v1225_v0 = vmov 0.0   ;;  %v219_v1 = vld [vmem:[#allocation5 + $0x8] sm:$0xff]  ;;  %v221_v2 = vld [vmem:[#allocation5 + $0x18] sm:$0xff]  ;;  %v218_v3 = vld [vmem:[#allocation5] sm:$0xff]  ;;  %vm366_vm0 = vcmask 1046528   ;;  %s856_s26 = sshll.u32 %s1270_s16, 8 }
  0x57   : > { %1198 = vsyncadd (%p1507_p1), [#allocation6], 4294950912  ;;  %314 = vmatprep.mubr.f32.mxu0 %v1225_v0  ;;  %579 = vmatprep.mubr.f32.mxu1 %v1225_v0  ;;  %v857_v4 = vpack.c.bf16 %v221_v2, %v219_v1  ;;  %v220_v5 = vld [vmem:[#allocation5 + $0x10] sm:$0xff]  ;;  %v223_v6 = vld [vmem:[#allocation5 + $0x28] sm:$0xff]  ;;  %s203_s5 = scalar_lea.vmem [#allocation7], %s842_s7  ;;  %vm733_vm1 = vcmask 1045504   ;;  %s1444_s28 = scalar_lea.hbm %s1493_s3, %s856_s26 }
  0x58   : > { %v225_v7 = vld [vmem:[#allocation5 + $0x38] sm:$0xff]  ;;  %v859_v8 = vpack.c.bf16 %v220_v5, %v218_v3  ;;  %v222_v10 = vld [vmem:[#allocation5 + $0x20] sm:$0xff]  ;;  %v224_v11 = vld [vmem:[#allocation5 + $0x30] sm:$0xff]  ;;  %s751_s10 = sshll.u32 %s203_s5, 4  ;;  %s738_s16 = scalar_lea.sflag [#allocation4], %s1388_s6  ;;  %s1446_s10 = int_to_ptr.vmem [resolvable:$true] %s751_s10 }
  0x59   : > { %v861_v9 = vpack.c.bf16 %v225_v7, %v223_v6  ;;  %v227_v12 = vld [vmem:[#allocation5 + $0x48] sm:$0xff]  ;;  %858 = vmatprep.subr.bf16.mxu0 %v857_v4  ;;  %v229_v13 = vld [vmem:[#allocation5 + $0x58] sm:$0xff]  ;;  %v863_v14 = vpack.c.bf16 %v224_v11, %v222_v10  ;;  %v226_v16 = vld [vmem:[#allocation5 + $0x40] sm:$0xff]  ;;  %s1147_s29 = scalar_lea.vmem %s1446_s10, 256  ;;  %s1226_s23 = smov [#allocation7]  }
  0x5a   : > { %860 = vmatpush1.bf16.msra.mxu0 %v859_v8  ;;  %v865_v15 = vpack.c.bf16 %v229_v13, %v227_v12  ;;  %v228_v17 = vld [vmem:[#allocation5 + $0x50] sm:$0xff]  ;;  %v231_v18 = vld [vmem:[#allocation5 + $0x68] sm:$0xff]  ;;  %v233_v19 = vld [vmem:[#allocation5 + $0x78] sm:$0xff]  ;;  %p1148_p4 = scmp.ne.s32.totalorder %s1446_s10, %s1147_s29  ;;  %s1151_s30 = sshll.u32 %s1226_s23, 4  ;;  %s1152_s30 = int_to_ptr.vmem [resolvable:$false] %s1151_s30 }
  0x5b   : > { %862 = vmatprep.subr.bf16.mxu0 %v861_v9  ;;  %v867_v20 = vpack.c.bf16 %v228_v17, %v226_v16  ;;  %v869_v21 = vpack.c.bf16 %v233_v19, %v231_v18  ;;  %v230_v22 = vld [vmem:[#allocation5 + $0x60] sm:$0xff]  ;;  %v232_v23 = vld [vmem:[#allocation5 + $0x70] sm:$0xff]  ;;  %v235_v24 = vld [vmem:[#allocation5 + $0x88] sm:$0xff]  ;;  %s1153_s22 = scalar_lea.vmem %s1152_s30, 512  ;;  %p1154_p10 = scmp.lt.s32.totalorder %s1446_s10, %s1152_s30 }
  0x5c   : > { %v237_v25 = vld [vmem:[#allocation5 + $0x98] sm:$0xff]  ;;  %v871_v26 = vpack.c.bf16 %v232_v23, %v230_v22  ;;  %v234_v28 = vld [vmem:[#allocation5 + $0x80] sm:$0xff]  ;;  %v236_v29 = vld [vmem:[#allocation5 + $0x90] sm:$0xff]  ;;  %p1149_p6 = pnand %p1148_p4, %p1340_p12  ;;  %p1155_p13 = scmp.lt.s32.totalorder %s1153_s22, %s1147_s29 }
  0x5d   : > { %v873_v27 = vpack.c.bf16 %v237_v25, %v235_v24  ;;  %v239_v30 = vld [vmem:[#allocation5 + $0xa8] sm:$0xff]  ;;  %v241_v31 = vld [vmem:[#allocation5 + $0xb8] sm:$0xff]  ;;  %v875_v32 = vpack.c.bf16 %v236_v29, %v234_v28  ;;  %v238_v34 = vld [vmem:[#allocation5 + $0xa0] sm:$0xff] }
  0x5e   : > { %864 = vmatpush1.bf16.msra.mxu0 %v863_v14  ;;  %v877_v33 = vpack.c.bf16 %v241_v31, %v239_v30  ;;  %v240_v35 = vld [vmem:[#allocation5 + $0xb0] sm:$0xff]  ;;  %v243_v36 = vld [vmem:[#allocation5 + $0xc8] sm:$0xff]  ;;  %v245_v37 = vld [vmem:[#allocation5 + $0xd8] sm:$0xff]  ;;  %p1150_p8 = pneg %p1149_p6  ;;  %p1156_p3 = por %p1155_p13, %p1154_p10 }
  0x5f   : > { %866 = vmatprep.subr.bf16.mxu0 %v865_v15  ;;  %v879_v38 = vpack.c.bf16 %v240_v35, %v238_v34  ;;  %v881_v39 = vpack.c.bf16 %v245_v37, %v243_v36  ;;  %v242_v40 = vld [vmem:[#allocation5 + $0xc0] sm:$0xff]  ;;  %v244_v41 = vld [vmem:[#allocation5 + $0xd0] sm:$0xff]  ;;  %v247_v42 = vld [vmem:[#allocation5 + $0xe8] sm:$0xff] }
  0x60   : > { %v249_v43 = vld [vmem:[#allocation5 + $0xf8] sm:$0xff]  ;;  %v484_v44 = vld [vmem:[#allocation5 + $0x208] sm:$0xff]  ;;  %v883_v47 = vpack.c.bf16 %v244_v41, %v242_v40  ;;  %v246_v49 = vld [vmem:[#allocation5 + $0xe0] sm:$0xff]  ;;  %p1157_p7 = pnand %p1156_p3, %p1150_p8 }
  0x61   : > { %v486_v45 = vld [vmem:[#allocation5 + $0x218] sm:$0xff]  ;;  %v885_v48 = vpack.c.bf16 %v249_v43, %v247_v42  ;;  %v248_v50 = vld [vmem:[#allocation5 + $0xf0] sm:$0xff]  ;;  %v333_v51 = vld [vmem:[#allocation5 + $0x108] sm:$0xff] }
  0x62   : > { %868 = vmatpush1.bf16.msra.mxu0 %v867_v20  ;;  %v921_v46 = vpack.c.bf16 %v486_v45, %v484_v44  ;;  %v335_v52 = vld [vmem:[#allocation5 + $0x118] sm:$0xff]  ;;  %v887_v53 = vpack.c.bf16 %v248_v50, %v246_v49  ;;  %v332_v55 = vld [vmem:[#allocation5 + $0x100] sm:$0xff]  ;;  %v334_v56 = vld [vmem:[#allocation5 + $0x110] sm:$0xff] }
  0x63   : > { %870 = vmatprep.subr.bf16.mxu0 %v869_v21  ;;  %v889_v54 = vpack.c.bf16 %v335_v52, %v333_v51  ;;  %v337_v57 = vld [vmem:[#allocation5 + $0x128] sm:$0xff]  ;;  %v339_v58 = vld [vmem:[#allocation5 + $0x138] sm:$0xff]  ;;  %v1407_v59 = vld [vmem:[%s1394_s9] sm:$0xff]  ;;  %v891_v60 = vpack.c.bf16 %v334_v56, %v332_v55 }
  0x64   : > { %922 = vmatprep.subr.bf16.mxu1 %v921_v46  ;;  %v893_v61 = vpack.c.bf16 %v339_v58, %v337_v57  ;;  %v336_v62 = vld [vmem:[#allocation5 + $0x120] sm:$0xff]  ;;  %v338_v63 = vld [vmem:[#allocation5 + $0x130] sm:$0xff]  ;;  %v341_v1 = vld [vmem:[#allocation5 + $0x148] sm:$0xff] }
  0x65   : > { %v343_v2 = vld [vmem:[#allocation5 + $0x158] sm:$0xff]  ;;  %v895_v3 = vpack.c.bf16 %v338_v63, %v336_v62  ;;  %v340_v6 = vld [vmem:[#allocation5 + $0x140] sm:$0xff]  ;;  %v342_v7 = vld [vmem:[#allocation5 + $0x150] sm:$0xff] }
  0x66   : > { %872 = vmatpush1.bf16.msra.mxu0 %v871_v26  ;;  %v205_v4 = vld [vmem:[%s1394_s9 + $0x8] sm:$0xff]  ;;  %v897_v5 = vpack.c.bf16 %v343_v2, %v341_v1  ;;  %v899_v10 = vpack.c.bf16 %v342_v7, %v340_v6  ;;  %v344_v12 = vld [vmem:[#allocation5 + $0x160] sm:$0xff]  ;;  %v346_v13 = vld [vmem:[#allocation5 + $0x170] sm:$0xff] }
  0x67   : > { %874 = vmatprep.subr.bf16.mxu0 %v873_v27  ;;  %v345_v8 = vld [vmem:[#allocation5 + $0x168] sm:$0xff]  ;;  %v347_v9 = vld [vmem:[#allocation5 + $0x178] sm:$0xff]  ;;  %v903_v16 = vpack.c.bf16 %v346_v13, %v344_v12  ;;  %v348_v18 = vld [vmem:[#allocation5 + $0x180] sm:$0xff] }
  0x68   : > { %v901_v11 = vpack.c.bf16 %v347_v9, %v345_v8  ;;  %v349_v14 = vld [vmem:[#allocation5 + $0x188] sm:$0xff]  ;;  %v351_v15 = vld [vmem:[#allocation5 + $0x198] sm:$0xff]  ;;  %v350_v19 = vld [vmem:[#allocation5 + $0x190] sm:$0xff] }
  0x69   : > { %v905_v17 = vpack.c.bf16 %v351_v15, %v349_v14  ;;  %v353_v20 = vld [vmem:[#allocation5 + $0x1a8] sm:$0xff]  ;;  %v355_v21 = vld [vmem:[#allocation5 + $0x1b8] sm:$0xff]  ;;  %v907_v22 = vpack.c.bf16 %v350_v19, %v348_v18  ;;  %v352_v24 = vld [vmem:[#allocation5 + $0x1a0] sm:$0xff] }
  0x6a   : > { %876 = vmatpush1.bf16.msra.mxu0 %v875_v32  ;;  %v909_v23 = vpack.c.bf16 %v355_v21, %v353_v20  ;;  %v354_v25 = vld [vmem:[#allocation5 + $0x1b0] sm:$0xff]  ;;  %v357_v26 = vld [vmem:[#allocation5 + $0x1c8] sm:$0xff]  ;;  %v359_v27 = vld [vmem:[#allocation5 + $0x1d8] sm:$0xff] }
  0x6b   : > { %878 = vmatprep.subr.bf16.mxu0 %v877_v33  ;;  %v911_v28 = vpack.c.bf16 %v354_v25, %v352_v24  ;;  %v913_v29 = vpack.c.bf16 %v359_v27, %v357_v26  ;;  %v356_v30 = vld [vmem:[#allocation5 + $0x1c0] sm:$0xff]  ;;  %v358_v31 = vld [vmem:[#allocation5 + $0x1d0] sm:$0xff]  ;;  %v361_v32 = vld [vmem:[#allocation5 + $0x1e8] sm:$0xff]  ;;  %v208_v27 = vlaneseq }
  0x6c   : > { %v363_v33 = vld [vmem:[#allocation5 + $0x1f8] sm:$0xff]  ;;  %v915_v34 = vpack.c.bf16 %v358_v31, %v356_v30  ;;  %v360_v36 = vld [vmem:[#allocation5 + $0x1e0] sm:$0xff]  ;;  %v362_v37 = vld [vmem:[#allocation5 + $0x1f0] sm:$0xff] }
  0x6d   : > { %v917_v35 = vpack.c.bf16 %v363_v33, %v361_v32  ;;  %v919_v40 = vpack.c.bf16 %v362_v37, %v360_v36  ;;  %v483_v42 = vld [vmem:[#allocation5 + $0x200] sm:$0xff]  ;;  %v485_v43 = vld [vmem:[#allocation5 + $0x210] sm:$0xff]  ;;  %v488_v45 = vld [vmem:[#allocation5 + $0x228] sm:$0xff] }
  0x6e   : > { %880 = vmatpush1.bf16.msra.mxu0 %v879_v38  ;;  %v367_v38 = vrot.slane %v1407_v59, 1  ;;  %v923_v44 = vpack.c.bf16 %v485_v43, %v483_v42  ;;  %v490_v46 = vld [vmem:[#allocation5 + $0x238] sm:$0xff]  ;;  %v489_v49 = vld [vmem:[#allocation5 + $0x230] sm:$0xff]  ;;  %v492_v51 = vld [vmem:[#allocation5 + $0x248] sm:$0xff] }
  0x6f   : > { %882 = vmatprep.subr.bf16.mxu0 %v881_v39  ;;  %v368_v39 = vrot.slane %v205_v4, 1  ;;  %v494_v52 = vld [vmem:[#allocation5 + $0x258] sm:$0xff]  ;;  %v493_v55 = vld [vmem:[#allocation5 + $0x250] sm:$0xff]  ;;  %v496_v57 = vld [vmem:[#allocation5 + $0x268] sm:$0xff] }
  0x70   : > { %924 = vmatpush1.bf16.msra.mxu1 %v923_v44  ;;  %v498_v58 = vld [vmem:[#allocation5 + $0x278] sm:$0xff]  ;;  %v500_v63 = vld [vmem:[#allocation5 + $0x288] sm:$0xff]  ;;  %v503_v9 = vld [vmem:[#allocation5 + $0x2a0] sm:$0xff] }
  0x71   : > { %v369_v41 = vsel %vm366_vm0, %v367_v38, %v368_v39  ;;  %v502_v1 = vld [vmem:[#allocation5 + $0x298] sm:$0xff]  ;;  %v504_v6 = vld [vmem:[#allocation5 + $0x2a8] sm:$0xff]  ;;  %v507_v15 = vld [vmem:[#allocation5 + $0x2c0] sm:$0xff] }
  0x72   : > { %884 = vmatpush1.bf16.msra.mxu0 %v883_v47  ;;  %v925_v47 = vpack.c.bf16 %v490_v46, %v488_v45  ;;  %v937_v2 = vpack.c.bf16 %v502_v1, %v500_v63  ;;  %v506_v7 = vld [vmem:[#allocation5 + $0x2b8] sm:$0xff]  ;;  %v508_v12 = vld [vmem:[#allocation5 + $0x2c8] sm:$0xff]  ;;  %v511_v20 = vld [vmem:[#allocation5 + $0x2e0] sm:$0xff] }
  0x73   : > { %886 = vmatprep.subr.bf16.mxu0 %v885_v48  ;;  %v487_v48 = vld [vmem:[#allocation5 + $0x220] sm:$0xff]  ;;  %v941_v8 = vpack.c.bf16 %v506_v7, %v504_v6  ;;  %v510_v13 = vld [vmem:[#allocation5 + $0x2d8] sm:$0xff]  ;;  %v512_v18 = vld [vmem:[#allocation5 + $0x2e8] sm:$0xff] }
  0x74   : > { %v927_v50 = vpack.c.bf16 %v489_v49, %v487_v48  ;;  %926 = vmatprep.subr.bf16.mxu1 %v925_v47  ;;  %v945_v14 = vpack.c.bf16 %v510_v13, %v508_v12  ;;  %v514_v19 = vld [vmem:[#allocation5 + $0x2f8] sm:$0xff]  ;;  %v206_v30 = vld [vmem:[%s1492_s2] sm:$0x3]  ;;  %v599_v49 = vld [vmem:[#allocation5 + $0x310] sm:$0xff] }
  0x75   : > { %v949_v21 = vpack.c.bf16 %v514_v19, %v512_v18  ;;  %v600_v24 = vld [vmem:[#allocation5 + $0x318] sm:$0xff]  ;;  %v597_v48 = vld [vmem:[#allocation5 + $0x300] sm:$0xff]  ;;  %v611_v12 = vld [vmem:[#allocation5 + $0x370] sm:$0xff] }
  0x76   : > { %888 = vmatpush1.bf16.msra.mxu0 %v887_v53  ;;  %928 = vmatpush1.bf16.msra.mxu1 %v927_v50  ;;  %v929_v53 = vpack.c.bf16 %v494_v52, %v492_v51  ;;  %v602_v50 = vld [vmem:[#allocation5 + $0x328] sm:$0xff]  ;;  %v604_v51 = vld [vmem:[#allocation5 + $0x338] sm:$0xff]  ;;  %v613_v18 = vld [vmem:[#allocation5 + $0x380] sm:$0xff] }
  0x77   : > { %890 = vmatprep.subr.bf16.mxu0 %v889_v54  ;;  %v491_v54 = vld [vmem:[#allocation5 + $0x240] sm:$0xff]  ;;  %v612_v6 = vld [vmem:[#allocation5 + $0x378] sm:$0xff]  ;;  %v615_v19 = vld [vmem:[#allocation5 + $0x390] sm:$0xff] }
  0x78   : > { %v931_v56 = vpack.c.bf16 %v493_v55, %v491_v54  ;;  %930 = vmatprep.subr.bf16.mxu1 %v929_v53  ;;  %v955_v54 = vpack.c.bf16 %v599_v49, %v597_v48 }
  0x79   : > { %315 = vmatmul.mubr.f32.vlgmr.msra.gmra.mrb[0].mxu0 %v1407_v59  ;;  %v933_v59 = vpack.c.bf16 %v498_v58, %v496_v57  ;;  %v601_v57 = vld [vmem:[#allocation5 + $0x320] sm:$0xff]  ;;  %v603_v58 = vld [vmem:[#allocation5 + $0x330] sm:$0xff] }
  0x7a   : > { %892 = vmatpush1.bf16.msra.mxu0 %v891_v60  ;;  %320 = vmatprep.mubr.f32.mxu0 %v1225_v0  ;;  %v495_v60 = vld [vmem:[#allocation5 + $0x260] sm:$0xff]  ;;  %v959_v63 = vpack.c.bf16 %v603_v58, %v601_v57 }
  0x7b   : > { %894 = vmatprep.subr.bf16.mxu0 %v893_v61  ;;  %932 = vmatpush1.bf16.msra.mxu1 %v931_v56  ;;  %v497_v61 = vld [vmem:[#allocation5 + $0x270] sm:$0xff]  ;;  %v957_v56 = vpack.c.bf16 %v604_v51, %v602_v50 }
  0x7c   : > { %v935_v62 = vpack.c.bf16 %v497_v61, %v495_v60  ;;  %934 = vmatprep.subr.bf16.mxu1 %v933_v59  ;;  %v606_v59 = vld [vmem:[#allocation5 + $0x348] sm:$0xff]  ;;  %v608_v60 = vld [vmem:[#allocation5 + $0x358] sm:$0xff] }
  0x7d   : > { %321 = vmatmul.mubr.f32.gmra.mrb[2].mxu0 %v205_v4  ;;  %v501_v4 = vld [vmem:[#allocation5 + $0x290] sm:$0xff] }
  0x7e   : > { %896 = vmatpush1.bf16.msra.mxu0 %v895_v3  ;;  %436 = vmatprep.mubr.f32.mxu0 %v1225_v0  ;;  %v499_v3 = vld [vmem:[#allocation5 + $0x280] sm:$0xff] }
  0x7f   : > { %898 = vmatprep.subr.bf16.mxu0 %v897_v5  ;;  %936 = vmatpush1.bf16.msra.mxu1 %v935_v62  ;;  %v939_v5 = vpack.c.bf16 %v501_v4, %v499_v3  ;;  %v605_v3 = vld [vmem:[#allocation5 + $0x340] sm:$0xff]  ;;  %v607_v4 = vld [vmem:[#allocation5 + $0x350] sm:$0xff] }
  0x80   : > { %938 = vmatprep.subr.bf16.mxu1 %v937_v2  ;;  %v961_v2 = vpack.c.bf16 %v608_v60, %v606_v59 }
  0x82   : > { %900 = vmatpush1.bf16.msra.mxu0 %v899_v10  ;;  %v505_v10 = vld [vmem:[#allocation5 + $0x2b0] sm:$0xff] }
  0x83   : > { %902 = vmatprep.subr.bf16.mxu0 %v901_v11  ;;  %940 = vmatpush1.bf16.msra.mxu1 %v939_v5  ;;  %v943_v11 = vpack.c.bf16 %v505_v10, %v503_v9  ;;  %v610_v5 = vld [vmem:[#allocation5 + $0x368] sm:$0xff]  ;;  %v963_v9 = vpack.c.bf16 %v607_v4, %v605_v3 }
  0x84   : > { %942 = vmatprep.subr.bf16.mxu1 %v941_v8  ;;  %v965_v10 = vpack.c.bf16 %v612_v6, %v610_v5 }
  0x86   : > { %904 = vmatpush1.bf16.msra.mxu0 %v903_v16  ;;  %v509_v16 = vld [vmem:[#allocation5 + $0x2d0] sm:$0xff] }
  0x87   : > { %906 = vmatprep.subr.bf16.mxu0 %v905_v17  ;;  %944 = vmatpush1.bf16.msra.mxu1 %v943_v11  ;;  %v947_v17 = vpack.c.bf16 %v509_v16, %v507_v15  ;;  %v609_v11 = vld [vmem:[#allocation5 + $0x360] sm:$0xff]  ;;  %v616_v15 = vld [vmem:[#allocation5 + $0x398] sm:$0xff] }
  0x88   : > { %946 = vmatprep.subr.bf16.mxu1 %v945_v14  ;;  %v614_v14 = vld [vmem:[#allocation5 + $0x388] sm:$0xff]  ;;  %v967_v16 = vpack.c.bf16 %v611_v12, %v609_v11 }
  0x8a   : > { %908 = vmatpush1.bf16.msra.mxu0 %v907_v22  ;;  %v513_v22 = vld [vmem:[#allocation5 + $0x2f0] sm:$0xff] }
  0x8b   : > { %910 = vmatprep.subr.bf16.mxu0 %v909_v23  ;;  %948 = vmatpush1.bf16.msra.mxu1 %v947_v17  ;;  %v598_v23 = vld [vmem:[#allocation5 + $0x308] sm:$0xff]  ;;  %v951_v25 = vpack.c.bf16 %v513_v22, %v511_v20  ;;  %v969_v17 = vpack.c.bf16 %v616_v15, %v614_v14  ;;  %v971_v22 = vpack.c.bf16 %v615_v19, %v613_v18 }
  0x8c   : > { %v953_v26 = vpack.c.bf16 %v600_v24, %v598_v23  ;;  %950 = vmatprep.subr.bf16.mxu1 %v949_v21  ;;  %v618_v20 = vld [vmem:[#allocation5 + $0x3a8] sm:$0xff]  ;;  %v620_v21 = vld [vmem:[#allocation5 + $0x3b8] sm:$0xff]  ;;  %v617_v24 = vld [vmem:[#allocation5 + $0x3a0] sm:$0xff] }
  0x8d   : > { %v973_v23 = vpack.c.bf16 %v620_v21, %v618_v20 }
  0x8e   : > { %912 = vmatpush1.bf16.msra.mxu0 %v911_v28  ;;  %v1416_v28 = vshrl.u32 %v208_v27, 7  ;;  %v624_v27 = vld [vmem:[#allocation5 + $0x3d8] sm:$0xff] }
  0x8f   : > { %914 = vmatprep.subr.bf16.mxu0 %v913_v29  ;;  %952 = vmatpush1.bf16.msra.mxu1 %v951_v25  ;;  %v619_v25 = vld [vmem:[#allocation5 + $0x3b0] sm:$0xff] }
  0x90   : > { %954 = vmatprep.subr.bf16.mxu1 %v953_v26  ;;  %v214_v29 = vsub.s32 1, %v1416_v28  ;;  %v210_v38 = vsub.s32 0, %v1416_v28  ;;  %v622_v26 = vld [vmem:[#allocation5 + $0x3c8] sm:$0xff] }
  0x92   : > { %916 = vmatpush1.bf16.msra.mxu0 %v915_v34  ;;  %v215_v31 = vrot.slane %v206_v30, %v214_v29 }
  0x93   : > { %918 = vmatprep.subr.bf16.mxu0 %v917_v35 }
  0x96   : > { %920 = vmatpush1.bf16.msra.mxu0 %v919_v40 }
  0x99   : > { %437 = vmatmul.mubr.f32.vlgmr.msra.gmra.mrb[0].mxu0 %v369_v41  ;;  %v211_v41 = vrot.slane %v206_v30, %v210_v38  ;;  %v975_v30 = vpack.c.bf16 %v619_v25, %v617_v24 }
  0x9a   : > { %442 = vmatprep.mubr.f32.mxu0 %v1225_v0 }
  0x9d   : > { %443 = vmatmul.mubr.f32.gmra.mrb[2].mxu0 %v368_v39 }
 0x16c   : > { %v438_v32 = vpop.f32.mrb[0].mxu0 }
 0x16d   : > { %v440_v33 = vpop.f32.mrb[1].mxu0  ;;  %v985_v42 = vadd.f32 %v438_v32, %v211_v41  ;;  %v621_v32 = vld [vmem:[#allocation5 + $0x3c0] sm:$0xff] }
 0x16e   : > { %v986_v34 = vadd.f32 %v440_v33, %v215_v31  ;;  %v623_v33 = vld [vmem:[#allocation5 + $0x3d0] sm:$0xff] }
 0x170   : > { %v845_v35 = vmul.f32 -1.442695, %v986_v34  ;;  %v444_v36 = vpop.f32.mrb[2].mxu0  ;;  %v626_v34 = vld [vmem:[#allocation5 + $0x3e8] sm:$0xff] }
 0x171   : > { %v446_v37 = vpop.f32.mrb[3].mxu0  ;;  %v987_v45 = vadd.f32 %v444_v36, %v211_v41  ;;  %v979_v36 = vpack.c.bf16 %v623_v33, %v621_v32 }
 0x172   : > { %1065 = vpow2.f32 %v845_v35  ;;  %v988_v39 = vadd.f32 %v446_v37, %v215_v31  ;;  %v977_v31 = vpack.c.bf16 %v624_v27, %v622_v26  ;;  %v628_v35 = vld [vmem:[#allocation5 + $0x3f8] sm:$0xff] }
 0x173   : > { %v981_v37 = vpack.c.bf16 %v628_v35, %v626_v34 }
 0x174   : > { %v846_v40 = vmul.f32 -1.442695, %v988_v39  ;;  %v625_v39 = vld [vmem:[#allocation5 + $0x3e0] sm:$0xff] }
 0x176   : > { %1067 = vpow2.f32 %v846_v40  ;;  %v627_v40 = vld [vmem:[#allocation5 + $0x3f0] sm:$0xff] }
 0x177   : > { %1069 = vtanh.f32 %v985_v42  ;;  %v983_v41 = vpack.c.bf16 %v627_v40, %v625_v39  ;;  %v847_v42 = vld [vmem:[%s1492_s2 + $0x2] sm:$0x3] }
 0x17c   : > { %v1066_v43 = vpop.eup %1065 }
 0x17d   : > { %v461_v44 = vadd.f32 1.0, %v1066_v43  ;;  %v479_v43 = vrot.slane %v847_v42, %v214_v29 }
 0x17f   : > { %1071 = vrcp.f32 %v461_v44 }
 0x180   : > { %v1068_v46 = vpop.eup %1067  ;;  %1073 = vtanh.f32 %v987_v45 }
 0x181   : > { %v462_v47 = vadd.f32 1.0, %v1068_v46  ;;  %v1070_v52 = vpop.eup %1069 }
 0x183   : > { %1075 = vrcp.f32 %v462_v47 }
 0x189   : > { %v1072_v53 = vpop.eup %1071 }
 0x18a   : > { %v467_v55 = vmul.f32 %v1072_v53, %v1070_v52  ;;  %v1074_v61 = vpop.eup %1073 }
 0x18c   : > { %580 = vmatmul.mubr.f32.vlgmr.msra.gmra.mrb[0].mxu1 %v467_v55  ;;  %v631_v7 = vrot.slane %v467_v55, 1 }
 0x18d   : > { %v1076_v62 = vpop.eup %1075  ;;  %956 = vmatpush1.bf16.msra.mxu1 %v955_v54  ;;  %585 = vmatprep.mubr.f32.mxu1 %v1225_v0 }
 0x18e   : > { %958 = vmatprep.subr.bf16.mxu1 %v957_v56  ;;  %v468_v1 = vmul.f32 %v1076_v62, %v1074_v61 }
 0x190   : > { %586 = vmatmul.mubr.f32.gmra.mrb[2].mxu1 %v468_v1  ;;  %v632_v8 = vrot.slane %v468_v1, 1 }
 0x191   : > { %960 = vmatpush1.bf16.msra.mxu1 %v959_v63  ;;  %700 = vmatprep.mubr.f32.mxu1 %v1225_v0 }
 0x192   : > { %962 = vmatprep.subr.bf16.mxu1 %v961_v2  ;;  %v633_v13 = vsel %vm366_vm0, %v631_v7, %v632_v8 }
 0x195   : > { %964 = vmatpush1.bf16.msra.mxu1 %v963_v9 }
 0x196   : > { %966 = vmatprep.subr.bf16.mxu1 %v965_v10 }
 0x199   : > { %968 = vmatpush1.bf16.msra.mxu1 %v967_v16 }
 0x19a   : > { %970 = vmatprep.subr.bf16.mxu1 %v969_v17 }
 0x19d   : > { %972 = vmatpush1.bf16.msra.mxu1 %v971_v22 }
 0x19e   : > { %974 = vmatprep.subr.bf16.mxu1 %v973_v23 }
 0x1a1   : > { %976 = vmatpush1.bf16.msra.mxu1 %v975_v30 }
 0x1a2   : > { %978 = vmatprep.subr.bf16.mxu1 %v977_v31 }
 0x1a5   : > { %980 = vmatpush1.bf16.msra.mxu1 %v979_v36 }
 0x1a6   : > { %982 = vmatprep.subr.bf16.mxu1 %v981_v37 }
 0x1a9   : > { %984 = vmatpush1.bf16.msra.mxu1 %v983_v41 }
 0x1ac   : > { %701 = vmatmul.mubr.f32.vlgmr.msra.gmra.mrb[0].mxu1 %v633_v13 }
 0x1ad   : > { %706 = vmatprep.mubr.f32.mxu1 %v1225_v0  ;;  %v475_v0 = vrot.slane %v847_v42, %v210_v38 }
 0x1b0   : > { %707 = vmatmul.mubr.f32.gmra.mrb[2].mxu1 %v632_v8 }
 0x27f   : > { %v702_v44 = vpop.f32.mrb[0].mxu1 }
 0x280   : > { %v704_v45 = vpop.f32.mrb[1].mxu1  ;;  %v989_v52 = vadd.f32 %v702_v44, %v475_v0 }
 0x281   : > { %v990_v46 = vadd.f32 %v704_v45, %v479_v43 }
 0x283   : > { %v848_v47 = vmul.f32 -1.442695, %v990_v46  ;;  %v708_v48 = vpop.f32.mrb[2].mxu1 }
 0x284   : > { %v710_v49 = vpop.f32.mrb[3].mxu1  ;;  %v991_v29 = vadd.f32 %v708_v48, %v475_v0 }
 0x285   : > { %1077 = vpow2.f32 %v848_v47  ;;  %v992_v50 = vadd.f32 %v710_v49, %v479_v43 }
 0x287   : > { %v849_v51 = vmul.f32 -1.442695, %v992_v50 }
 0x289   : > { %1079 = vpow2.f32 %v849_v51 }
 0x28a   : > { %1081 = vtanh.f32 %v989_v52 }
 0x28f   : > { %v1078_v53 = vpop.eup %1077 }
 0x290   : > { %v725_v54 = vadd.f32 1.0, %v1078_v53 }
 0x292   : > { %1083 = vrcp.f32 %v725_v54 }
 0x293   : > { %v1080_v55 = vpop.eup %1079  ;;  %1085 = vtanh.f32 %v991_v29 }
 0x294   : > { %v726_v56 = vadd.f32 1.0, %v1080_v55  ;;  %v1082_v57 = vpop.eup %1081 }
 0x296   : > { %1087 = vrcp.f32 %v726_v56 }
 0x29c   : > { %v1084_v58 = vpop.eup %1083 }
 0x29d   : > { %v731_v59 = vmul.f32 %v1084_v58, %v1082_v57  ;;  %v1086_v28 = vpop.eup %1085 }
 0x29f   : > { %735 = vst [vmem:[%s203_s5] sm:$0xff] %v731_v59 }
 0x2a0   : > { %v1088_v38 = vpop.eup %1087 }
 0x2a1   : > { %v732_v60 = vmul.f32 %v1088_v38, %v1086_v28 }
 0x2a3   : > { %v734_v61 = vsel %vm733_vm1, %v732_v60, 0.0 }
 0x2a4   : > { %736 = vst [vmem:[%s203_s5 + $0x8] sm:$0xff] %v734_v61 }
 0x2a5   : > { %1160 = shalt.err (!%p1157_p7)
}
 0x2a6   : > { %s1161_s7 = scalar_lea.hbm %s1444_s28, 256  ;;  %s1165_s18 = scalar_lea.hbm %s1493_s3, 512 }
 0x2a7   : > { %p1162_p9 = scmp.ne.s32.totalorder %s1444_s28, %s1161_s7  ;;  %p1166_p5 = scmp.lt.u32.totalorder %s1444_s28, %s1493_s3 }
 0x2a8   : > { %p1167_p11 = scmp.lt.u32.totalorder %s1165_s18, %s1161_s7  ;;  %p1169_p4 = scmp.lt.u32.totalorder %s1161_s7, %s1444_s28 }
 0x2a9   : > { %p1163_p2 = pnand %p1162_p9, %p1340_p12 }
 0x2aa   : > { %p1168_p1 = por %p1167_p11, %p1166_p5 }
 0x2ab   : > { %p1164_p0 = pneg %p1163_p2 }
 0x2ac   : > { %p1170_p6 = por %p1169_p4, %p1168_p1 }
 0x2ae   : > { %p1171_p8 = pnand %p1170_p6, %p1164_p0 }
 0x2b0   : > { %1174 = shalt.err (!%p1171_p8)
}
 0x2b1   : > { %s1227_s25 = smov 128   ;;  %s1228_s26 = smov 8  }
 0x2b2   : > { %1007 = dma.vmem_to_hbm [thread:$0]  (%p1340_p12), %s1446_s10, 256, %s1444_s28, %s738_s16, %s1227_s25, %s1227_s25, %s1228_s26  }
 0x2b3 PF: > { %s766_s5 = sand.u32 1, %s1205_s12   ;;  %p1508_p10 = scmp.ne.s32.totalorder %s1498_s19, 0 }
 0x2b4   : > { %p1509_p13 = scmp.ge.s32.totalorder %s1217_s15, 2  ;;  %s767_s11 = scalar_lea.sflag [#allocation4], %s766_s5 }
 0x2b6   : > { %p1018_p3 = pnand %p1509_p13, %p1508_p10 }
 0x2b8   : > { %1200 = dma.done.wait (!%p1018_p3), %s767_s11, 256  }
 0x2b9   : > { %1202 = vsyncadd (!%p1018_p3), %s767_s11, 4294967040  ;;  %p17_p7 = scmp.ge.s32.totalorder %s1305_s24, 4   ;;  %s1510_s12 = smov %s1209_s13 }
 0x2ba   : > { %s1511_s13 = smov %s1213_s14  ;;  %s1512_s14 = smov %s1336_s17 }
 0x2bb   : > { %s1513_s15 = smov %s1305_s24  ;;  %19 = sbr.rel (!%p17_p7) target bundleno = 6 (0x6), region = 85 }
 0x2c2   :  { %772 = vsyncpa [#allocation3], 1 }
 0x2c3   :  { %774 = vsyncpa [#allocation3 + $0x1], 1 }
 0x2c4   :  { %775 = vsyncpa [#allocation6], 1 }
 0x2c5   :  { %776 = vsyncpa [#allocation4], 1 }
 0x2c6   :  { %778 = vsyncpa [#allocation4 + $0x1], 1 }

</bundles_post_ra>
